<compile_context>
chip_gen: v7x
topology: tpu7x:2x2x1
jax: 0.10.0
libtpu: 0.0.40
codegen_flags: <defaults>
</compile_context>

<pallas_src>
import math

import jax
import jax.numpy as jnp
from jax.experimental import pallas as pl
from jax.experimental.pallas import tpu as pltpu


# --------------------------------------------------------------------------- #
# Kernel
# --------------------------------------------------------------------------- #
def _make_mha_kernel(G, depth):
    """Returns the kernel, closed over the static head-group size / depth."""

    def kernel(q_ref, kh_ref, vh_ref, wq_ref, bq_ref, wo_ref, bo_ref,
               out_ref, attn_ref, ctx_ref):
        g_idx = pl.program_id(2)

        # Lane-dense grouped q projection on the MXU: (tq, D) @ (D, G*depth),
        # bf16 operands, f32 accumulation.  1/sqrt(depth) folded into wq/bq.
        q_proj = jnp.dot(q_ref[0], wq_ref[0],
                         preferred_element_type=jnp.float32) + bq_ref[0]
        q_proj = q_proj.astype(jnp.bfloat16)                 # (tq, G*depth)

        # Per-head attention inside the group (G is small -> static unroll).
        for g in range(G):
            q_h = q_proj[:, g * depth:(g + 1) * depth]       # (tq, depth) bf16
            k_h = kh_ref[0, g]                               # (S, depth) bf16
            v_h = vh_ref[0, g]                               # (S, depth) bf16

            # q_h @ k_h^T without materializing a transpose: contract depth.
            scores = jax.lax.dot_general(
                q_h, k_h, (((1,), (1,)), ((), ())),
                preferred_element_type=jnp.float32)          # (tq, S) f32

            # Numerically stable softmax; exact f32 normalization so the
            # STORED attention weights sum to 1 (matches torch.softmax).
            scores = scores - jnp.max(scores, axis=-1, keepdims=True)
            e = jnp.exp(scores)
            attn = e * (1.0 / jnp.sum(e, axis=-1, keepdims=True))

            attn_ref[0, g] = attn                            # lane-dense (tq, S)

            ctx = jnp.dot(attn.astype(jnp.bfloat16), v_h,
                          preferred_element_type=jnp.float32)  # (tq, depth)
            ctx_ref[:, g * depth:(g + 1) * depth] = ctx

        # One lane-dense output matmul per group: (tq, G*depth) @ (G*depth, D),
        # accumulated into the resident output block across head groups.
        contrib = jnp.dot(ctx_ref[...].astype(jnp.bfloat16), wo_ref[0],
                          preferred_element_type=jnp.float32)  # (tq, D)

        @pl.when(g_idx == 0)
        def _():
            out_ref[0] = bo_ref[...] + contrib

        @pl.when(g_idx != 0)
        def _():
            out_ref[0] = out_ref[0] + contrib

    return kernel


# --------------------------------------------------------------------------- #
# Tiling / VMEM planning helpers
# --------------------------------------------------------------------------- #
def _pick_head_group(num_heads, depth, lane_target=128):
    """Smallest divisor G of num_heads with G*depth >= lane_target."""
    for g in range(1, num_heads + 1):
        if num_heads % g == 0 and g * depth >= lane_target:
            return g
    return num_heads


def _vmem_plan():
    """Generation-aware VMEM limit / planning budget (bytes)."""
    try:
        cap = pltpu.get_tpu_info().vmem_capacity_bytes
    except Exception:
        cap = 64 * 1024 * 1024          # v7x floor: be conservative
    limit = min(int(cap * 0.8), 96 * 1024 * 1024)
    budget = (limit * 3) // 4           # headroom for compiler temporaries
    return limit, budget


def _vmem_estimate(tq, S, D, depth, G):
    bf, f4 = 2, 4
    b = 0
    b += 2 * tq * D * bf                # q block (double buffered, bf16)
    b += 2 * 2 * G * S * depth * bf     # kh + vh blocks (bf16)
    b += 2 * D * G * depth * bf         # wq slab
    b += 2 * G * depth * f4             # bq
    b += 2 * G * depth * D * bf         # wo slab
    b += 2 * D * f4                     # bo
    b += 2 * tq * D * f4                # out block
    b += 2 * G * tq * S * f4            # attn block
    b += tq * G * depth * f4            # ctx scratch
    b += 4 * tq * S * f4                # softmax temporaries headroom
    return b


def _pick_tq(B, S, D, depth, G, budget):
    candidates = [c for c in (1024, 512, 256, 128, 64, 32, 16, 8) if S % c == 0]
    tq = None
    for c in candidates:
        if _vmem_estimate(c, S, D, depth, G) <= budget:
            tq = c
            break
    if tq is None:
        tq = candidates[-1] if candidates else S
    # Megacore occupancy: the parallel axes are (B, S//tq); make sure there
    # are at least 2 parallel grid iterations for v7x's 2 TensorCores.
    while B * (S // tq) < 2 and tq % 16 == 0:
        tq //= 2
    return tq


# --------------------------------------------------------------------------- #
# One-time parameter prep (outside the per-call path)
# --------------------------------------------------------------------------- #
def prepare_mha_params(params, num_heads, lane_target=128):
    """PyTorch Linear stores W as (out, in): y = x @ W.T + b."""
    D = params["wq_w"].shape[0]
    assert D % num_heads == 0
    depth = D // num_heads
    G = _pick_head_group(num_heads, depth, lane_target)
    n_groups = num_heads // G
    scale = 1.0 / math.sqrt(depth)

    def group_cols(w_t):                 # (D, D) -> (n_groups, D, G*depth)
        return jnp.transpose(w_t.reshape(D, n_groups, G * depth), (1, 0, 2))

    wq_t = params["wq_w"].T * scale      # fold 1/sqrt(depth) into wq / bq
    bq_g = (params["wq_b"] * scale).reshape(n_groups, 1, G * depth)
    wo_g = params["wo_w"].T.reshape(n_groups, G * depth, D)

    return {
        "num_heads": num_heads,
        "depth": depth,
        "group": G,
        # q projection (in-kernel): grouped, scale-folded, bf16 for the MXU.
        "wq_g": group_cols(wq_t).astype(jnp.bfloat16),
        "bq_g": bq_g.astype(jnp.float32),
        # K/V projections (hoisted to XLA in the wrapper): bf16 weights.
        "wk_t": params["wk_w"].T.astype(jnp.bfloat16),
        "bk": params["wk_b"].astype(jnp.float32),
        "wv_t": params["wv_w"].T.astype(jnp.bfloat16),
        "bv": params["wv_b"].astype(jnp.float32),
        # Output projection: rows grouped to match the head groups.
        "wo_g": wo_g.astype(jnp.bfloat16),
        "bo": params["wo_b"].reshape(1, D).astype(jnp.float32),
    }


# --------------------------------------------------------------------------- #
# Forward pass
# --------------------------------------------------------------------------- #
def mha_forward(q, k, v, prep, mask=None):
    """q, k, v: (B, S, D) f32. Returns (output (B,S,D), attn (B,H,S,S))."""
    assert mask is None  # TODO(synk): optional additive mask not implemented.
    B, S, D = q.shape
    H = prep["num_heads"]
    depth = prep["depth"]
    G = prep["group"]
    n_groups = H // G

    # Hoisted K/V projections: plain XLA GEMMs (full lane density), split to
    # per-head (B, H, S, depth) slabs, cast to bf16 for the kernel's MXU work.
    kp = jnp.dot(k.astype(jnp.bfloat16), prep["wk_t"],
                 preferred_element_type=jnp.float32) + prep["bk"]
    vp = jnp.dot(v.astype(jnp.bfloat16), prep["wv_t"],
                 preferred_element_type=jnp.float32) + prep["bv"]
    kh = jnp.transpose(kp.reshape(B, S, H, depth), (0, 2, 1, 3))
    vh = jnp.transpose(vp.reshape(B, S, H, depth), (0, 2, 1, 3))
    kh = kh.astype(jnp.bfloat16)
    vh = vh.astype(jnp.bfloat16)
    q_bf = q.astype(jnp.bfloat16)

    vmem_limit, vmem_budget = _vmem_plan()
    tq = _pick_tq(B, S, D, depth, G, vmem_budget)
    n_qt = S // tq
    grid = (B, n_qt, n_groups)

    kernel = _make_mha_kernel(G, depth)

    out, attn = pl.pallas_call(
        kernel,
        out_shape=(
            jax.ShapeDtypeStruct((B, S, D), jnp.float32),
            # TODO(synk): attn weights kept f32 to match torch.softmax exactly;
            # emit bf16 here if downstream tolerates it (halves HBM writeback).
            jax.ShapeDtypeStruct((B, H, S, S), jnp.float32),
        ),
        grid_spec=pltpu.PrefetchScalarGridSpec(
            num_scalar_prefetch=0,
            grid=grid,
            in_specs=[
                pl.BlockSpec((1, tq, D), lambda b, qt, g: (b, qt, 0)),          # q
                pl.BlockSpec((1, G, S, depth), lambda b, qt, g: (b, g, 0, 0)),  # kh
                pl.BlockSpec((1, G, S, depth), lambda b, qt, g: (b, g, 0, 0)),  # vh
                pl.BlockSpec((1, D, G * depth), lambda b, qt, g: (g, 0, 0)),    # wq
                pl.BlockSpec((1, 1, G * depth), lambda b, qt, g: (g, 0, 0)),    # bq
                pl.BlockSpec((1, G * depth, D), lambda b, qt, g: (g, 0, 0)),    # wo
                pl.BlockSpec((1, D), lambda b, qt, g: (0, 0)),                  # bo
            ],
            out_specs=[
                pl.BlockSpec((1, tq, D), lambda b, qt, g: (b, qt, 0)),          # out
                pl.BlockSpec((1, G, tq, S), lambda b, qt, g: (b, g, qt, 0)),    # attn
            ],
            scratch_shapes=[pltpu.VMEM((tq, G * depth), jnp.float32)],
        ),
        compiler_params=pltpu.CompilerParams(
            dimension_semantics=("parallel", "parallel", "arbitrary"),
            vmem_limit_bytes=vmem_limit,
        ),
    )(q_bf, kh, vh, prep["wq_g"], prep["bq_g"], prep["wo_g"], prep["bo"])
    return out, attn


# --------------------------------------------------------------------------- #
# Plain-JAX reference (mirrors the PyTorch module, all f32)
# --------------------------------------------------------------------------- #
def _reference(q, k, v, params, *, num_heads):
    B, S, D = q.shape
    depth = D // num_heads

    def lin(x, w, b):
        return x @ w.T + b

    qp = lin(q, params["wq_w"], params["wq_b"])
    kp = lin(k, params["wk_w"], params["wk_b"])
    vp = lin(v, params["wv_w"], params["wv_b"])

    def split(x):
        return x.reshape(B, S, num_heads, depth).transpose(0, 2, 1, 3)

    qh, kh, vh = split(qp), split(kp), split(vp)
    logits = jnp.einsum("bhqd,bhkd->bhqk", qh, kh) / jnp.sqrt(jnp.float32(depth))
    attn = jax.nn.softmax(logits, axis=-1)
    ctx = jnp.einsum("bhqk,bhkd->bhqd", attn, vh)
    ctx = ctx.transpose(0, 2, 1, 3).reshape(B, S, D)
    out = lin(ctx, params["wo_w"], params["wo_b"])
    return out, attn


if __name__ == "__main__":
    B, S, D, H = 2, 8, 32, 4

    key = jax.random.PRNGKey(0)
    keys = jax.random.split(key, 12)
    params = {
        "wq_w": jax.random.normal(keys[0], (D, D), jnp.float32) * 0.1,
        "wq_b": jax.random.normal(keys[1], (D,), jnp.float32) * 0.1,
        "wk_w": jax.random.normal(keys[2], (D, D), jnp.float32) * 0.1,
        "wk_b": jax.random.normal(keys[3], (D,), jnp.float32) * 0.1,
        "wv_w": jax.random.normal(keys[4], (D, D), jnp.float32) * 0.1,
        "wv_b": jax.random.normal(keys[5], (D,), jnp.float32) * 0.1,
        "wo_w": jax.random.normal(keys[6], (D, D), jnp.float32) * 0.1,
        "wo_b": jax.random.normal(keys[7], (D,), jnp.float32) * 0.1,
    }
    q = jax.random.normal(keys[8], (B, S, D), jnp.float32)
    k = jax.random.normal(keys[9], (B, S, D), jnp.float32)
    v = jax.random.normal(keys[10], (B, S, D), jnp.float32)

    # One-time weight prep, then a jitted forward (prep is a closed-over const).
    prep = prepare_mha_params(params, num_heads=H)
    fwd = jax.jit(lambda q, k, v: mha_forward(q, k, v, prep))

    out, attn = fwd(q, k, v)
    out = jax.block_until_ready(out)
    attn = jax.block_until_ready(attn)

    out_ref, attn_ref = _reference(q, k, v, params, num_heads=H)
    assert out.shape == (B, S, D) and attn.shape == (B, H, S, S)
    # Tolerances account for bf16 MXU operands (f32 accumulation, f32 softmax).
    assert jnp.allclose(out, out_ref, atol=2e-2, rtol=2e-2)
    assert jnp.allclose(attn, attn_ref, atol=1e-2, rtol=1e-2)

    print("KERNEL_OK")
</pallas_src>

<mosaic_0001>
module attributes {stable_mosaic.version = 11 : i64} {
  func.func @kernel(%arg0: i32, %arg1: i32, %arg2: i32, %arg3: memref<1x8x32xbf16, #tpu.memory_space<vmem>>, %arg4: memref<1x4x8x8xbf16, #tpu.memory_space<vmem>>, %arg5: memref<1x4x8x8xbf16, #tpu.memory_space<vmem>>, %arg6: memref<1x32x32xbf16, #tpu.memory_space<vmem>>, %arg7: memref<1x1x32xf32, #tpu.memory_space<vmem>>, %arg8: memref<1x32x32xbf16, #tpu.memory_space<vmem>>, %arg9: memref<1x32xf32, #tpu.memory_space<vmem>>, %arg10: memref<1x8x32xf32, #tpu.memory_space<vmem>>, %arg11: memref<1x4x8x8xf32, #tpu.memory_space<vmem>>, %arg12: memref<8x32xf32, #tpu.memory_space<vmem>>) attributes {dimension_semantics = [#tpu.dimension_semantics<parallel>, #tpu.dimension_semantics<parallel>, #tpu.dimension_semantics<arbitrary>], iteration_bounds = array<i64: 2, 1, 1>, scalar_prefetch = 0 : i64, scratch_operands = 1 : i64, tpu.core_type = #tpu.core_type<tc>, window_params = [{transform_indices = @transform_0, window_bounds = array<i64: 1, 8, 32>}, {transform_indices = @transform_1, window_bounds = array<i64: 1, 4, 8, 8>}, {transform_indices = @transform_2, window_bounds = array<i64: 1, 4, 8, 8>}, {transform_indices = @transform_3, window_bounds = array<i64: 1, 32, 32>}, {transform_indices = @transform_4, window_bounds = array<i64: 1, 1, 32>}, {transform_indices = @transform_5, window_bounds = array<i64: 1, 32, 32>}, {pipeline_mode = #tpu.pipeline_mode<synchronous>, transform_indices = @transform_6, window_bounds = array<i64: 1, 32>}, {transform_indices = @transform_7, window_bounds = array<i64: 1, 8, 32>}, {transform_indices = @transform_8, window_bounds = array<i64: 1, 4, 8, 8>}]} {
    %c0 = arith.constant 0 : index
    %c0_0 = arith.constant 0 : index
    %c0_1 = arith.constant 0 : index
    %0 = vector.load %arg3[%c0, %c0_0, %c0_1] : memref<1x8x32xbf16, #tpu.memory_space<vmem>>, vector<1x8x32xbf16>
    %1 = vector.shape_cast %0 : vector<1x8x32xbf16> to vector<8x32xbf16>
    %c0_2 = arith.constant 0 : index
    %c0_3 = arith.constant 0 : index
    %c0_4 = arith.constant 0 : index
    %2 = vector.load %arg6[%c0_2, %c0_3, %c0_4] : memref<1x32x32xbf16, #tpu.memory_space<vmem>>, vector<1x32x32xbf16>
    %3 = vector.shape_cast %2 : vector<1x32x32xbf16> to vector<32x32xbf16>
    %cst = arith.constant dense<0.000000e+00> : vector<8x32xf32>
    %4 = tpu.matmul %1, %3, %cst {dimension_numbers = #tpu.dot_dimension_numbers<[1], [0], [0], [1], [0, 0, 1, 1], [], []>} : vector<8x32xbf16>, vector<32x32xbf16>, vector<8x32xf32> -> vector<8x32xf32>
    %c0_5 = arith.constant 0 : index
    %c0_6 = arith.constant 0 : index
    %c0_7 = arith.constant 0 : index
    %5 = vector.load %arg7[%c0_5, %c0_6, %c0_7] : memref<1x1x32xf32, #tpu.memory_space<vmem>>, vector<1x1x32xf32>
    %6 = vector.shape_cast %5 : vector<1x1x32xf32> to vector<1x32xf32>
    %7 = vector.broadcast %6 : vector<1x32xf32> to vector<8x32xf32>
    %8 = arith.addf %4, %7 : vector<8x32xf32>
    %9 = arith.truncf %8 : vector<8x32xf32> to vector<8x32xbf16>
    %10 = vector.extract_strided_slice %9 {offsets = [0, 0], sizes = [8, 8], strides = [1, 1]} : vector<8x32xbf16> to vector<8x8xbf16>
    %c0_8 = arith.constant 0 : index
    %c0_9 = arith.constant 0 : index
    %c0_10 = arith.constant 0 : index
    %c0_11 = arith.constant 0 : index
    %11 = vector.load %arg4[%c0_8, %c0_9, %c0_10, %c0_11] : memref<1x4x8x8xbf16, #tpu.memory_space<vmem>>, vector<1x1x8x8xbf16>
    %12 = vector.shape_cast %11 : vector<1x1x8x8xbf16> to vector<8x8xbf16>
    %c0_12 = arith.constant 0 : index
    %c0_13 = arith.constant 0 : index
    %c0_14 = arith.constant 0 : index
    %c0_15 = arith.constant 0 : index
    %13 = vector.load %arg5[%c0_12, %c0_13, %c0_14, %c0_15] : memref<1x4x8x8xbf16, #tpu.memory_space<vmem>>, vector<1x1x8x8xbf16>
    %14 = vector.shape_cast %13 : vector<1x1x8x8xbf16> to vector<8x8xbf16>
    %cst_16 = arith.constant dense<0.000000e+00> : vector<8x8xf32>
    %15 = tpu.matmul %10, %12, %cst_16 {dimension_numbers = #tpu.dot_dimension_numbers<[1], [1], [0], [0], [0, 0, 1, 0], [], []>} : vector<8x8xbf16>, vector<8x8xbf16>, vector<8x8xf32> -> vector<8x8xf32>
    %cst_17 = arith.constant dense<0xFF800000> : vector<8xf32>
    %16 = vector.multi_reduction <maximumf>, %15, %cst_17 [1] : vector<8x8xf32> to vector<8xf32>
    %17 = vector.shape_cast %16 : vector<8xf32> to vector<8x1xf32>
    %18 = vector.broadcast %17 : vector<8x1xf32> to vector<8x8xf32>
    %19 = arith.subf %15, %18 : vector<8x8xf32>
    %20 = math.exp %19 : vector<8x8xf32>
    %cst_18 = arith.constant dense<0.000000e+00> : vector<8xf32>
    %21 = vector.multi_reduction <add>, %20, %cst_18 [1] : vector<8x8xf32> to vector<8xf32>
    %22 = vector.shape_cast %21 : vector<8xf32> to vector<8x1xf32>
    %cst_19 = arith.constant 1.000000e+00 : f32
    %23 = vector.broadcast %cst_19 : f32 to vector<8x1xf32>
    %24 = arith.divf %23, %22 : vector<8x1xf32>
    %25 = vector.broadcast %24 : vector<8x1xf32> to vector<8x8xf32>
    %26 = arith.mulf %20, %25 : vector<8x8xf32>
    %c0_20 = arith.constant 0 : index
    %c0_21 = arith.constant 0 : index
    %c0_22 = arith.constant 0 : index
    %c0_23 = arith.constant 0 : index
    %27 = vector.load %arg11[%c0_20, %c0_21, %c0_22, %c0_23] : memref<1x4x8x8xf32, #tpu.memory_space<vmem>>, vector<1x1x8x8xf32>
    %28 = vector.shape_cast %27 : vector<1x1x8x8xf32> to vector<8x8xf32>
    %29 = vector.shape_cast %26 : vector<8x8xf32> to vector<1x1x8x8xf32>
    tpu.vector_store %arg11[%c0_20, %c0_21, %c0_22, %c0_23], %29 {strides = array<i32>} : memref<1x4x8x8xf32, #tpu.memory_space<vmem>>, vector<1x1x8x8xf32>,
    %30 = arith.truncf %26 : vector<8x8xf32> to vector<8x8xbf16>
    %cst_24 = arith.constant dense<0.000000e+00> : vector<8x8xf32>
    %31 = tpu.matmul %30, %14, %cst_24 {dimension_numbers = #tpu.dot_dimension_numbers<[1], [0], [0], [1], [0, 0, 1, 1], [], []>} : vector<8x8xbf16>, vector<8x8xbf16>, vector<8x8xf32> -> vector<8x8xf32>
    %c0_25 = arith.constant 0 : index
    %c0_26 = arith.constant 0 : index
    %32 = vector.load %arg12[%c0_25, %c0_26] : memref<8x32xf32, #tpu.memory_space<vmem>>, vector<8x8xf32>
    tpu.vector_store %arg12[%c0_25, %c0_26], %31 {strides = array<i32>} : memref<8x32xf32, #tpu.memory_space<vmem>>, vector<8x8xf32>,
    %33 = vector.extract_strided_slice %9 {offsets = [0, 8], sizes = [8, 8], strides = [1, 1]} : vector<8x32xbf16> to vector<8x8xbf16>
    %c0_27 = arith.constant 0 : index
    %c1 = arith.constant 1 : index
    %c0_28 = arith.constant 0 : index
    %c0_29 = arith.constant 0 : index
    %34 = vector.load %arg4[%c0_27, %c1, %c0_28, %c0_29] : memref<1x4x8x8xbf16, #tpu.memory_space<vmem>>, vector<1x1x8x8xbf16>
    %35 = vector.shape_cast %34 : vector<1x1x8x8xbf16> to vector<8x8xbf16>
    %c0_30 = arith.constant 0 : index
    %c1_31 = arith.constant 1 : index
    %c0_32 = arith.constant 0 : index
    %c0_33 = arith.constant 0 : index
    %36 = vector.load %arg5[%c0_30, %c1_31, %c0_32, %c0_33] : memref<1x4x8x8xbf16, #tpu.memory_space<vmem>>, vector<1x1x8x8xbf16>
    %37 = vector.shape_cast %36 : vector<1x1x8x8xbf16> to vector<8x8xbf16>
    %cst_34 = arith.constant dense<0.000000e+00> : vector<8x8xf32>
    %38 = tpu.matmul %33, %35, %cst_34 {dimension_numbers = #tpu.dot_dimension_numbers<[1], [1], [0], [0], [0, 0, 1, 0], [], []>} : vector<8x8xbf16>, vector<8x8xbf16>, vector<8x8xf32> -> vector<8x8xf32>
    %cst_35 = arith.constant dense<0xFF800000> : vector<8xf32>
    %39 = vector.multi_reduction <maximumf>, %38, %cst_35 [1] : vector<8x8xf32> to vector<8xf32>
    %40 = vector.shape_cast %39 : vector<8xf32> to vector<8x1xf32>
    %41 = vector.broadcast %40 : vector<8x1xf32> to vector<8x8xf32>
    %42 = arith.subf %38, %41 : vector<8x8xf32>
    %43 = math.exp %42 : vector<8x8xf32>
    %cst_36 = arith.constant dense<0.000000e+00> : vector<8xf32>
    %44 = vector.multi_reduction <add>, %43, %cst_36 [1] : vector<8x8xf32> to vector<8xf32>
    %45 = vector.shape_cast %44 : vector<8xf32> to vector<8x1xf32>
    %cst_37 = arith.constant 1.000000e+00 : f32
    %46 = vector.broadcast %cst_37 : f32 to vector<8x1xf32>
    %47 = arith.divf %46, %45 : vector<8x1xf32>
    %48 = vector.broadcast %47 : vector<8x1xf32> to vector<8x8xf32>
    %49 = arith.mulf %43, %48 : vector<8x8xf32>
    %c0_38 = arith.constant 0 : index
    %c1_39 = arith.constant 1 : index
    %c0_40 = arith.constant 0 : index
    %c0_41 = arith.constant 0 : index
    %50 = vector.load %arg11[%c0_38, %c1_39, %c0_40, %c0_41] : memref<1x4x8x8xf32, #tpu.memory_space<vmem>>, vector<1x1x8x8xf32>
    %51 = vector.shape_cast %50 : vector<1x1x8x8xf32> to vector<8x8xf32>
    %52 = vector.shape_cast %49 : vector<8x8xf32> to vector<1x1x8x8xf32>
    tpu.vector_store %arg11[%c0_38, %c1_39, %c0_40, %c0_41], %52 {strides = array<i32>} : memref<1x4x8x8xf32, #tpu.memory_space<vmem>>, vector<1x1x8x8xf32>,
    %53 = arith.truncf %49 : vector<8x8xf32> to vector<8x8xbf16>
    %cst_42 = arith.constant dense<0.000000e+00> : vector<8x8xf32>
    %54 = tpu.matmul %53, %37, %cst_42 {dimension_numbers = #tpu.dot_dimension_numbers<[1], [0], [0], [1], [0, 0, 1, 1], [], []>} : vector<8x8xbf16>, vector<8x8xbf16>, vector<8x8xf32> -> vector<8x8xf32>
    %c0_43 = arith.constant 0 : index
    %c8 = arith.constant 8 : index
    %55 = vector.load %arg12[%c0_43, %c8] : memref<8x32xf32, #tpu.memory_space<vmem>>, vector<8x8xf32>
    tpu.vector_store %arg12[%c0_43, %c8], %54 {strides = array<i32>} : memref<8x32xf32, #tpu.memory_space<vmem>>, vector<8x8xf32>,
    %56 = vector.extract_strided_slice %9 {offsets = [0, 16], sizes = [8, 8], strides = [1, 1]} : vector<8x32xbf16> to vector<8x8xbf16>
    %c0_44 = arith.constant 0 : index
    %c2 = arith.constant 2 : index
    %c0_45 = arith.constant 0 : index
    %c0_46 = arith.constant 0 : index
    %57 = vector.load %arg4[%c0_44, %c2, %c0_45, %c0_46] : memref<1x4x8x8xbf16, #tpu.memory_space<vmem>>, vector<1x1x8x8xbf16>
    %58 = vector.shape_cast %57 : vector<1x1x8x8xbf16> to vector<8x8xbf16>
    %c0_47 = arith.constant 0 : index
    %c2_48 = arith.constant 2 : index
    %c0_49 = arith.constant 0 : index
    %c0_50 = arith.constant 0 : index
    %59 = vector.load %arg5[%c0_47, %c2_48, %c0_49, %c0_50] : memref<1x4x8x8xbf16, #tpu.memory_space<vmem>>, vector<1x1x8x8xbf16>
    %60 = vector.shape_cast %59 : vector<1x1x8x8xbf16> to vector<8x8xbf16>
    %cst_51 = arith.constant dense<0.000000e+00> : vector<8x8xf32>
    %61 = tpu.matmul %56, %58, %cst_51 {dimension_numbers = #tpu.dot_dimension_numbers<[1], [1], [0], [0], [0, 0, 1, 0], [], []>} : vector<8x8xbf16>, vector<8x8xbf16>, vector<8x8xf32> -> vector<8x8xf32>
    %cst_52 = arith.constant dense<0xFF800000> : vector<8xf32>
    %62 = vector.multi_reduction <maximumf>, %61, %cst_52 [1] : vector<8x8xf32> to vector<8xf32>
    %63 = vector.shape_cast %62 : vector<8xf32> to vector<8x1xf32>
    %64 = vector.broadcast %63 : vector<8x1xf32> to vector<8x8xf32>
    %65 = arith.subf %61, %64 : vector<8x8xf32>
    %66 = math.exp %65 : vector<8x8xf32>
    %cst_53 = arith.constant dense<0.000000e+00> : vector<8xf32>
    %67 = vector.multi_reduction <add>, %66, %cst_53 [1] : vector<8x8xf32> to vector<8xf32>
    %68 = vector.shape_cast %67 : vector<8xf32> to vector<8x1xf32>
    %cst_54 = arith.constant 1.000000e+00 : f32
    %69 = vector.broadcast %cst_54 : f32 to vector<8x1xf32>
    %70 = arith.divf %69, %68 : vector<8x1xf32>
    %71 = vector.broadcast %70 : vector<8x1xf32> to vector<8x8xf32>
    %72 = arith.mulf %66, %71 : vector<8x8xf32>
    %c0_55 = arith.constant 0 : index
    %c2_56 = arith.constant 2 : index
    %c0_57 = arith.constant 0 : index
    %c0_58 = arith.constant 0 : index
    %73 = vector.load %arg11[%c0_55, %c2_56, %c0_57, %c0_58] : memref<1x4x8x8xf32, #tpu.memory_space<vmem>>, vector<1x1x8x8xf32>
    %74 = vector.shape_cast %73 : vector<1x1x8x8xf32> to vector<8x8xf32>
    %75 = vector.shape_cast %72 : vector<8x8xf32> to vector<1x1x8x8xf32>
    tpu.vector_store %arg11[%c0_55, %c2_56, %c0_57, %c0_58], %75 {strides = array<i32>} : memref<1x4x8x8xf32, #tpu.memory_space<vmem>>, vector<1x1x8x8xf32>,
    %76 = arith.truncf %72 : vector<8x8xf32> to vector<8x8xbf16>
    %cst_59 = arith.constant dense<0.000000e+00> : vector<8x8xf32>
    %77 = tpu.matmul %76, %60, %cst_59 {dimension_numbers = #tpu.dot_dimension_numbers<[1], [0], [0], [1], [0, 0, 1, 1], [], []>} : vector<8x8xbf16>, vector<8x8xbf16>, vector<8x8xf32> -> vector<8x8xf32>
    %c0_60 = arith.constant 0 : index
    %c16 = arith.constant 16 : index
    %78 = vector.load %arg12[%c0_60, %c16] : memref<8x32xf32, #tpu.memory_space<vmem>>, vector<8x8xf32>
    tpu.vector_store %arg12[%c0_60, %c16], %77 {strides = array<i32>} : memref<8x32xf32, #tpu.memory_space<vmem>>, vector<8x8xf32>,
    %79 = vector.extract_strided_slice %9 {offsets = [0, 24], sizes = [8, 8], strides = [1, 1]} : vector<8x32xbf16> to vector<8x8xbf16>
    %c0_61 = arith.constant 0 : index
    %c3 = arith.constant 3 : index
    %c0_62 = arith.constant 0 : index
    %c0_63 = arith.constant 0 : index
    %80 = vector.load %arg4[%c0_61, %c3, %c0_62, %c0_63] : memref<1x4x8x8xbf16, #tpu.memory_space<vmem>>, vector<1x1x8x8xbf16>
    %81 = vector.shape_cast %80 : vector<1x1x8x8xbf16> to vector<8x8xbf16>
    %c0_64 = arith.constant 0 : index
    %c3_65 = arith.constant 3 : index
    %c0_66 = arith.constant 0 : index
    %c0_67 = arith.constant 0 : index
    %82 = vector.load %arg5[%c0_64, %c3_65, %c0_66, %c0_67] : memref<1x4x8x8xbf16, #tpu.memory_space<vmem>>, vector<1x1x8x8xbf16>
    %83 = vector.shape_cast %82 : vector<1x1x8x8xbf16> to vector<8x8xbf16>
    %cst_68 = arith.constant dense<0.000000e+00> : vector<8x8xf32>
    %84 = tpu.matmul %79, %81, %cst_68 {dimension_numbers = #tpu.dot_dimension_numbers<[1], [1], [0], [0], [0, 0, 1, 0], [], []>} : vector<8x8xbf16>, vector<8x8xbf16>, vector<8x8xf32> -> vector<8x8xf32>
    %cst_69 = arith.constant dense<0xFF800000> : vector<8xf32>
    %85 = vector.multi_reduction <maximumf>, %84, %cst_69 [1] : vector<8x8xf32> to vector<8xf32>
    %86 = vector.shape_cast %85 : vector<8xf32> to vector<8x1xf32>
    %87 = vector.broadcast %86 : vector<8x1xf32> to vector<8x8xf32>
    %88 = arith.subf %84, %87 : vector<8x8xf32>
    %89 = math.exp %88 : vector<8x8xf32>
    %cst_70 = arith.constant dense<0.000000e+00> : vector<8xf32>
    %90 = vector.multi_reduction <add>, %89, %cst_70 [1] : vector<8x8xf32> to vector<8xf32>
    %91 = vector.shape_cast %90 : vector<8xf32> to vector<8x1xf32>
    %cst_71 = arith.constant 1.000000e+00 : f32
    %92 = vector.broadcast %cst_71 : f32 to vector<8x1xf32>
    %93 = arith.divf %92, %91 : vector<8x1xf32>
    %94 = vector.broadcast %93 : vector<8x1xf32> to vector<8x8xf32>
    %95 = arith.mulf %89, %94 : vector<8x8xf32>
    %c0_72 = arith.constant 0 : index
    %c3_73 = arith.constant 3 : index
    %c0_74 = arith.constant 0 : index
    %c0_75 = arith.constant 0 : index
    %96 = vector.load %arg11[%c0_72, %c3_73, %c0_74, %c0_75] : memref<1x4x8x8xf32, #tpu.memory_space<vmem>>, vector<1x1x8x8xf32>
    %97 = vector.shape_cast %96 : vector<1x1x8x8xf32> to vector<8x8xf32>
    %98 = vector.shape_cast %95 : vector<8x8xf32> to vector<1x1x8x8xf32>
    tpu.vector_store %arg11[%c0_72, %c3_73, %c0_74, %c0_75], %98 {strides = array<i32>} : memref<1x4x8x8xf32, #tpu.memory_space<vmem>>, vector<1x1x8x8xf32>,
    %99 = arith.truncf %95 : vector<8x8xf32> to vector<8x8xbf16>
    %cst_76 = arith.constant dense<0.000000e+00> : vector<8x8xf32>
    %100 = tpu.matmul %99, %83, %cst_76 {dimension_numbers = #tpu.dot_dimension_numbers<[1], [0], [0], [1], [0, 0, 1, 1], [], []>} : vector<8x8xbf16>, vector<8x8xbf16>, vector<8x8xf32> -> vector<8x8xf32>
    %c0_77 = arith.constant 0 : index
    %c24 = arith.constant 24 : index
    %101 = vector.load %arg12[%c0_77, %c24] : memref<8x32xf32, #tpu.memory_space<vmem>>, vector<8x8xf32>
    tpu.vector_store %arg12[%c0_77, %c24], %100 {strides = array<i32>} : memref<8x32xf32, #tpu.memory_space<vmem>>, vector<8x8xf32>,
    %c0_78 = arith.constant 0 : index
    %c0_79 = arith.constant 0 : index
    %102 = vector.load %arg12[%c0_78, %c0_79] : memref<8x32xf32, #tpu.memory_space<vmem>>, vector<8x32xf32>
    %103 = arith.truncf %102 : vector<8x32xf32> to vector<8x32xbf16>
    %c0_80 = arith.constant 0 : index
    %c0_81 = arith.constant 0 : index
    %c0_82 = arith.constant 0 : index
    %104 = vector.load %arg8[%c0_80, %c0_81, %c0_82] : memref<1x32x32xbf16, #tpu.memory_space<vmem>>, vector<1x32x32xbf16>
    %105 = vector.shape_cast %104 : vector<1x32x32xbf16> to vector<32x32xbf16>
    %cst_83 = arith.constant dense<0.000000e+00> : vector<8x32xf32>
    %106 = tpu.matmul %103, %105, %cst_83 {dimension_numbers = #tpu.dot_dimension_numbers<[1], [0], [0], [1], [0, 0, 1, 1], [], []>} : vector<8x32xbf16>, vector<32x32xbf16>, vector<8x32xf32> -> vector<8x32xf32>
    %c0_i32 = arith.constant 0 : i32
    %107 = arith.cmpi eq, %arg2, %c0_i32 : i32
    %108 = arith.extui %107 : i1 to i32
    %c0_i32_84 = arith.constant 0 : i32
    %109 = arith.cmpi ne, %108, %c0_i32_84 : i32
    scf.if %109 {
      %c0_87 = arith.constant 0 : index
      %c0_88 = arith.constant 0 : index
      %113 = vector.load %arg9[%c0_87, %c0_88] : memref<1x32xf32, #tpu.memory_space<vmem>>, vector<1x32xf32>
      %114 = vector.broadcast %113 : vector<1x32xf32> to vector<8x32xf32>
      %115 = arith.addf %114, %106 : vector<8x32xf32>
      %c0_89 = arith.constant 0 : index
      %c0_90 = arith.constant 0 : index
      %c0_91 = arith.constant 0 : index
      %116 = vector.load %arg10[%c0_89, %c0_90, %c0_91] : memref<1x8x32xf32, #tpu.memory_space<vmem>>, vector<1x8x32xf32>
      %117 = vector.shape_cast %116 : vector<1x8x32xf32> to vector<8x32xf32>
      %118 = vector.shape_cast %115 : vector<8x32xf32> to vector<1x8x32xf32>
      tpu.vector_store %arg10[%c0_89, %c0_90, %c0_91], %118 {strides = array<i32>} : memref<1x8x32xf32, #tpu.memory_space<vmem>>, vector<1x8x32xf32>,
    } else {
    }
    %c0_i32_85 = arith.constant 0 : i32
    %110 = arith.cmpi ne, %arg2, %c0_i32_85 : i32
    %111 = arith.extui %110 : i1 to i32
    %c0_i32_86 = arith.constant 0 : i32
    %112 = arith.cmpi ne, %111, %c0_i32_86 : i32
    scf.if %112 {
      %c0_87 = arith.constant 0 : index
      %c0_88 = arith.constant 0 : index
      %c0_89 = arith.constant 0 : index
      %113 = vector.load %arg10[%c0_87, %c0_88, %c0_89] : memref<1x8x32xf32, #tpu.memory_space<vmem>>, vector<1x8x32xf32>
      %114 = vector.shape_cast %113 : vector<1x8x32xf32> to vector<8x32xf32>
      %115 = arith.addf %114, %106 : vector<8x32xf32>
      %c0_90 = arith.constant 0 : index
      %c0_91 = arith.constant 0 : index
      %c0_92 = arith.constant 0 : index
      %116 = vector.load %arg10[%c0_90, %c0_91, %c0_92] : memref<1x8x32xf32, #tpu.memory_space<vmem>>, vector<1x8x32xf32>
      %117 = vector.shape_cast %116 : vector<1x8x32xf32> to vector<8x32xf32>
      %118 = vector.shape_cast %115 : vector<8x32xf32> to vector<1x8x32xf32>
      tpu.vector_store %arg10[%c0_90, %c0_91, %c0_92], %118 {strides = array<i32>} : memref<1x8x32xf32, #tpu.memory_space<vmem>>, vector<1x8x32xf32>,
    } else {
    }
    return
  }
  func.func @transform_0(%arg0: i32, %arg1: i32, %arg2: i32) -> (i32, i32, i32) {
    %c0_i32 = arith.constant 0 : i32
    %c0_i32_0 = arith.constant 0 : i32
    return %arg0, %arg1, %c0_i32 : i32, i32, i32
  }
  func.func @transform_1(%arg0: i32, %arg1: i32, %arg2: i32) -> (i32, i32, i32, i32) {
    %c0_i32 = arith.constant 0 : i32
    %c0_i32_0 = arith.constant 0 : i32
    %c0_i32_1 = arith.constant 0 : i32
    return %arg0, %arg2, %c0_i32, %c0_i32_0 : i32, i32, i32, i32
  }
  func.func @transform_2(%arg0: i32, %arg1: i32, %arg2: i32) -> (i32, i32, i32, i32) {
    %c0_i32 = arith.constant 0 : i32
    %c0_i32_0 = arith.constant 0 : i32
    %c0_i32_1 = arith.constant 0 : i32
    return %arg0, %arg2, %c0_i32, %c0_i32_0 : i32, i32, i32, i32
  }
  func.func @transform_3(%arg0: i32, %arg1: i32, %arg2: i32) -> (i32, i32, i32) {
    %c0_i32 = arith.constant 0 : i32
    %c0_i32_0 = arith.constant 0 : i32
    %c0_i32_1 = arith.constant 0 : i32
    return %arg2, %c0_i32, %c0_i32_0 : i32, i32, i32
  }
  func.func @transform_4(%arg0: i32, %arg1: i32, %arg2: i32) -> (i32, i32, i32) {
    %c0_i32 = arith.constant 0 : i32
    %c0_i32_0 = arith.constant 0 : i32
    %c0_i32_1 = arith.constant 0 : i32
    return %arg2, %c0_i32, %c0_i32_0 : i32, i32, i32
  }
  func.func @transform_5(%arg0: i32, %arg1: i32, %arg2: i32) -> (i32, i32, i32) {
    %c0_i32 = arith.constant 0 : i32
    %c0_i32_0 = arith.constant 0 : i32
    %c0_i32_1 = arith.constant 0 : i32
    return %arg2, %c0_i32, %c0_i32_0 : i32, i32, i32
  }
  func.func @transform_6(%arg0: i32, %arg1: i32, %arg2: i32) -> (i32, i32) {
    %c0_i32 = arith.constant 0 : i32
    %c0_i32_0 = arith.constant 0 : i32
    %c0_i32_1 = arith.constant 0 : i32
    return %c0_i32, %c0_i32_0 : i32, i32
  }
  func.func @transform_7(%arg0: i32, %arg1: i32, %arg2: i32) -> (i32, i32, i32) {
    %c0_i32 = arith.constant 0 : i32
    %c0_i32_0 = arith.constant 0 : i32
    return %arg0, %arg1, %c0_i32 : i32, i32, i32
  }
  func.func @transform_8(%arg0: i32, %arg1: i32, %arg2: i32) -> (i32, i32, i32, i32) {
    %c0_i32 = arith.constant 0 : i32
    %c0_i32_0 = arith.constant 0 : i32
    return %arg0, %arg2, %arg1, %c0_i32 : i32, i32, i32, i32
  }
}

</mosaic_0001>

<bundles_post_ra>
// kernel: _lambda_.1
= control target key start
LH: loop header
LB: loop body
LE: loop exit
PB: predicated region body
PF: predicated region fallthrough
CT: control target
= control target key end

     0   :  { %s1981_s0 = inlined_call_operand.vmem [shape: bf16[2,8,32], index: 0, kind: input, shape index: {}]   ;;  %s1982_s1 = inlined_call_operand.vmem [shape: bf16[2,4,8,8], index: 1, kind: input, shape index: {}]   ;;  %s1983_s2 = inlined_call_operand.vmem [shape: bf16[2,4,8,8], index: 2, kind: input, shape index: {}]   ;;  %s1984_s3 = inlined_call_operand.vmem [shape: bf16[1,32,32], index: 3, kind: input, shape index: {}]   ;;  %s1985_s4 = inlined_call_operand.vmem [shape: f32[1,1,32], index: 4, kind: input, shape index: {}]   ;;  %s1986_s5 = inlined_call_operand.vmem [shape: bf16[1,32,32], index: 5, kind: input, shape index: {}]   ;;  %s1987_s6 = inlined_call_operand.vmem [shape: f32[1,32], index: 6, kind: input, shape index: {}]   ;;  %s1988_s7 = inlined_call_operand.hbm [shape: f32[2,8,32], index: 7, kind: output, shape index: {0}]   ;;  %s1989_s8 = inlined_call_operand.hbm [shape: f32[2,4,8,8], index: 8, kind: output, shape index: {1}]  }
   0x1   :  { %1990 = sst [smem:[#allocation9_spill]] %s1981_s0 }
   0x2   :  { %1991 = sst [smem:[#allocation10_spill]] %s1982_s1 }
   0x3   :  { %1992 = sst [smem:[#allocation11_spill]] %s1983_s2 }
   0x4   :  { %14 = vsyncpa [#allocation4], 0 }
   0x5   :  { %16 = vsyncpa [#allocation4 + $0x1], 0 }
   0x6   :  { %17 = vsyncpa [#allocation6], 0 }
   0x7   :  { %19 = vsyncpa [#allocation6 + $0x1], 0  ;;  %s1715_s27 = smov 0   ;;  %s1717_s28 = smov 0  }
   0x8   :  { %s1719_s29 = smov 0   ;;  %s1721_s30 = smov 0  }
   0x9   :  { %s1723_s9 = smov 0   ;;  %s1725_s10 = smov 0  }
   0xa LB: > { %s1322_s11 = sadd.s32 4294967295, %s1657_s10   ;;  %s1323_s12 = sadd.s32 4294967294, %s1657_s10   ;;  %s1657_s10 = sphi %s1725_s10, %s25_s10   ;;  %s1653_s9 = sphi %s1723_s9, %s2003_s9   ;;  %s1649_s30 = sphi %s1721_s30, %s2002_s30   ;;  %s1645_s29 = sphi %s1719_s29, %s2001_s29   ;;  %s1641_s28 = sphi %s1717_s28, %s2000_s28   ;;  %s1637_s27 = sphi %s1715_s27, %s1999_s27  }
   0xb   : > { %s44_s13 = sadd.s32 1, %s1653_s9  ;;  %s236_s14 = sadd.s32 1, %s1645_s29 }
   0xc   : > { %p46_p0 = scmp.ge.s32.totalorder %s44_s13, 2  ;;  %p246_p1 = scmp.ne.s32.totalorder %s1645_s29, %s1641_s28 }
   0xd   : > { %p247_p2 = scmp.eq.s32.totalorder %s1322_s11, 1  ;;  %p252_p3 = scmp.ne.s32.totalorder %s1641_s28, %s1637_s27 }
   0xe   : > { %s2005_s13 = smov (%p46_p0, %s44_s13), 0  ;;  %p253_p5 = scmp.eq.s32.totalorder %s1323_s12, 1 }
   0xf   : > { %p1755_p4 = por %p247_p2, %p246_p1  ;;  %s231_s16 = ssub.s32 %s1653_s9, %s2005_s13 }
  0x10   : > { %p1329_p6 = scmp.ge.s32.totalorder %s1657_s10, 1  ;;  %p234_p7 = scmp.eq.s32.totalorder %s231_s16, 0 }
  0x11   : > { %p1762_p8 = por %p253_p5, %p252_p3  ;;  %p362_p9 = scmp.lt.s32.totalorder %s1657_s10, 3 }
  0x12   : > { %s1768_s18 = scalar_select %p234_p7, %s1645_s29, %s236_s14  }
  0x13   : > { %p363_p10 = pnand %p1329_p6, %p362_p9 }
  0x14   : > { %v1527_v0 = vld [vmem:[%s1984_s3] sm:$0xff] (!%p363_p10)   ;;  %v1659_v1 = vmov (!%p363_p10), 0.0   ;;  %v1528_v2 = vld [vmem:[%s1984_s3 + $0x8] sm:$0xff] (!%p363_p10)   ;;  %vm1660_vm0 = vmmov (!%p363_p10), 0   ;;  %p434_p11 = scmp.lt.s32.totalorder (!%p363_p10), %s1649_s30, 1  ;;  %vm500_vm1 = vcmask (!%p363_p10), 261120  }
  0x15   : > { %366 = sbr.rel (%p363_p10) target bundleno = 1473 (0x5c1), region = 48  ;;  %1394 = vmatprep.subr.bf16.mxu0 (!%p363_p10), %v1659_v1  ;;  %1402 = vmatprep.subr.bf16.mxu1 (!%p363_p10), %v1659_v1  ;;  %vm547_vm2 = vcmask (!%p363_p10), 64512   ;;  %s1995_s0 = sld [smem:[#allocation9_spill]] (!%p363_p10)  ;;  %v1337_v6 = vld [vmem:[%s1985_s4] ss:$0 sm:$0xff] (!%p363_p10)  ;;  %vm611_vm3 = vcmask (!%p363_p10), 1043456  }
  0x16   : > { %1395 = vmatpush3.bf16.msra.mxu0 (!%p363_p10), %v1527_v0  ;;  %1398 = vmatprep.mubr.msk.bf16.mxu0 (!%p363_p10), %vm1660_vm0, %v1659_v1  ;;  %s1996_s1 = sld [smem:[#allocation10_spill]] (!%p363_p10)  ;;  %s1661_s22 = smov (!%p363_p10), 104   ;;  %vm774_vm4 = vcmask (!%p363_p10), 130112   ;;  %vm893_vm5 = vcmask (!%p363_p10), 195712   ;;  %vm1012_vm6 = vcmask (!%p363_p10), 261312  }
  0x17   : > { %1396 = vmatprep.subr.bf16.mxu0 (!%p363_p10), %v1659_v1  ;;  %1404 = vmatprep.mubr.msk.bf16.mxu1 (!%p363_p10), %vm1660_vm0, %v1659_v1  ;;  %s1663_s26 = smov (!%p363_p10), 112   ;;  %s1997_s2 = sld [smem:[#allocation11_spill]] (!%p363_p10) }
  0x18   : > { %s1666_s11 = smov (!%p363_p10), 24  }
  0x1a   : > { %1397 = vmatpush3.bf16.msra.mxu0 (!%p363_p10), %v1528_v2 }
  0x1b   : > { %1408 = vmatprep.subr.bf16.mxu0 (!%p363_p10), %v1659_v1 }
  0x1c   : > { %s1785_s23 = scalar_select %p434_p11, %s1649_s30, 1 }
  0x1e   : > { %s1332_s24 = sshll.u32 %s1785_s23, 2  ;;  %s1369_s25 = sshll.u32 %s1785_s23, 4 }
  0x1f   : > { %s440_s12 = scalar_lea.vmem %s1995_s0, %s1332_s24  ;;  %s1797_s19 = scalar_lea.vmem %s1996_s1, %s1369_s25 }
  0x20   : > { %v476_v3 = vld [vmem:[%s440_s12] sm:$0xf]  ;;  %v1343_v10 = vld [vmem:[%s1797_s19 + $0x4] sm:$0xf]  ;;  %s1662_s24 = smov 120   ;;  %s1840_s14 = scalar_lea.vmem %s1997_s2, %s1369_s25 }
  0x21   : > { %v545_v4 = vld [vmem:[%s1797_s19] sm:$0xf]  ;;  %1399 = vmatmul.mubr.msk.bf16.vlgmr.msra.gmra.mrb[0].mxu0 %vm500_vm1, %v476_v3  ;;  %v667_v14 = vsel %vm547_vm2, %v1343_v10, 0  ;;  %v1348_v15 = vld [vmem:[%s1797_s19 + $0x8] sm:$0xf]  ;;  %s1849_s23 = sand.u32 1, %s1641_s28  }
  0x22   : > { %v552_v5 = vsel %vm547_vm2, %v545_v4, 0  ;;  %1410 = vmatprep.mubr.msk.bf16.mxu0 %vm1660_vm0, %v1659_v1  ;;  %v786_v16 = vsel %vm547_vm2, %v1348_v15, 0  ;;  %v1353_v18 = vld [vmem:[%s1797_s19 + $0xc] sm:$0xf]  ;;  %v546_v47 = vld [vmem:[%s1840_s14] sm:$0xf] }
  0x23   : > { %1403 = vmatpush3.bf16.xpose.msra.mxu1 %v552_v5  ;;  %v905_v19 = vsel %vm547_vm2, %v1353_v18, 0  ;;  %v613_v48 = vsel %vm611_vm3, %v546_v47, 0  ;;  %s1331_s25 = sshll.u32 %s1849_s23, 5  ;;  %v1344_v3 = vld [vmem:[%s1840_s14 + $0x4] sm:$0xf]  ;;  %s1664_s19 = smov 8  }
  0x24   : > { %1414 = vmatprep.subr.bf16.mxu1 %v1659_v1  ;;  %1409 = vmatpush3.bf16.msra.mxu0 %v613_v48  ;;  %s1854_s16 = scalar_lea.vmem [#allocation5], %s1331_s25  ;;  %v1349_v10 = vld [vmem:[%s1840_s14 + $0x8] sm:$0xf] }
  0x25   : > { %1420 = vmatprep.subr.bf16.mxu0 %v1659_v1  ;;  %s1131_s12 = sshll.u32 %s1854_s16, 4  ;;  %s1892_s12 = int_to_ptr.vmem [resolvable:$true] %s1131_s12 }
  0xf4   : > { %v538_v7 = vpop.f32.mrb[0].mxu0 }
  0xf5   : > { %v539_v8 = vadd.f32 %v1337_v6, %v538_v7  ;;  %v1400_v9 = vpop.f32.mrb[1].mxu0  ;;  %v728_v6 = vsel %vm611_vm3, %v1344_v3, 0 }
  0xf6   : > { %v541_v11 = vpop.f32.mrb[2].mxu0 }
  0xf7   : > { %v544_v12 = vpack.c.bf16 %v539_v8, %v539_v8  ;;  %v1401_v13 = vpop.f32.mrb[3].mxu0 }
  0xf8   : > { %v847_v13 = vsel %vm611_vm3, %v1349_v10, 0 }
  0xf9   : > { %899 = vrot.lane.b32.xlu1 %v544_v12, %s1661_s22  ;;  %661 = vrot.lane.b32.xlu0 %v544_v12, %s1662_s24  ;;  %s1547_s24 = scalar_lea.vmem %s1892_s12, 512 }
  0xfa   : > { %1405 = vmatmul.mubr.msk.bf16.vlgmr.msra.gmra.mrb[0].mxu1 %vm547_vm2, %v544_v12  ;;  %p1548_p12 = scmp.ne.s32.totalorder %s1892_s12, %s1547_s24 }
  0xfb   : > { %1415 = vmatpush3.bf16.xpose.msra.mxu1 %v667_v14  ;;  %1416 = vmatprep.mubr.msk.bf16.mxu1 %vm1660_vm0, %v1659_v1 }
  0xfc   : > { %1426 = vmatprep.subr.bf16.mxu1 %v1659_v1  ;;  %p1549_p13 = pnand %p1548_p12, %p1755_p4 }
  0xfd   : > { %780 = vrot.lane.b32.xlu0 %v544_v12, %s1663_s26  ;;  %s1665_s26 = smov 16  }
  0xfe   : > { %p1550_p0 = pneg %p1549_p13 }
 0x16b   : > { %v662_v17 = vpop.permute.xlu0 %661  ;;  %v900_v21 = vpop.permute.xlu1 %899 }
 0x16c   : > { %1417 = vmatmul.mubr.msk.bf16.vlgmr.msra.gmra.mrb[4].mxu1 %vm547_vm2, %v662_v17 }
 0x16d   : > { %1427 = vmatpush3.bf16.xpose.msra.mxu1 %v786_v16  ;;  %1428 = vmatprep.mubr.msk.bf16.mxu1 %vm1660_vm0, %v1659_v1  ;;  %v1354_v16 = vld [vmem:[%s1840_s14 + $0xc] sm:$0xf]  ;;  %s1371_s14 = sshll.u32 %s1649_s30, 9 }
 0x16e   : > { %1438 = vmatprep.subr.bf16.mxu1 %v1659_v1  ;;  %s1897_s21 = scalar_lea.hbm %s1989_s8, %s1371_s14 }
 0x16f   : > { %v781_v20 = vpop.permute.xlu0 %780 }
 0x174   : > { %1429 = vmatmul.mubr.msk.bf16.vlgmr.msra.gmra.mrb[8].mxu1 %vm547_vm2, %v781_v20 }
 0x175   : > { %1439 = vmatpush3.bf16.xpose.msra.mxu1 %v905_v19  ;;  %1440 = vmatprep.mubr.msk.bf16.mxu1 %vm1660_vm0, %v1659_v1  ;;  %v966_v19 = vsel %vm611_vm3, %v1354_v16, 0 }
 0x176   : > { %1450 = vmatprep.subr.bf16.mxu1 %v1659_v1 }
 0x17c   : > { %1441 = vmatmul.mubr.msk.bf16.vlgmr.msra.gmra.mrb[12].mxu1 %vm547_vm2, %v900_v21 }
 0x17d   : > { %1454 = vmatprep.mubr.msk.bf16.mxu1 %vm1660_vm0, %v1659_v1 }
 0x1cd   : > { %v588_v22 = vpop.f32.mrb[0].mxu1 }
 0x1ce   : > { %v1406_v23 = vpop.f32.mrb[1].mxu1  ;;  %v594_v24 = vsel %vm547_vm2, %v588_v22, -inf }
 0x1cf   : > { %595 = vmax.xlane.f32.xlu1 %v594_v24  ;;  %v591_v25 = vpop.f32.mrb[2].mxu1 }
 0x1d0   : > { %v1407_v26 = vpop.f32.mrb[3].mxu1 }
 0x23f   : > { %v703_v27 = vpop.f32.mrb[4].mxu1 }
 0x240   : > { %v1418_v28 = vpop.f32.mrb[5].mxu1  ;;  %v709_v29 = vsel %vm547_vm2, %v703_v27, -inf }
 0x241   : > { %710 = vmax.xlane.f32.xlu0 %v709_v29  ;;  %v706_v30 = vpop.f32.mrb[6].mxu1 }
 0x242   : > { %v1419_v31 = vpop.f32.mrb[7].mxu1 }
 0x243   : > { %v1529_v31 = vld [vmem:[%s1986_s5] sm:$0xff]  }
 0x244   : > { %1451 = vmatpush3.bf16.msra.mxu1 %v1529_v31 }
 0x245   : > { %1452 = vmatprep.subr.bf16.mxu1 %v1659_v1 }
 0x247   : > { %v822_v32 = vpop.f32.mrb[8].mxu1 }
 0x248   : > { %v1430_v33 = vpop.f32.mrb[9].mxu1  ;;  %v828_v34 = vsel %vm547_vm2, %v822_v32, -inf }
 0x249   : > { %829 = vmax.xlane.f32.xlu0 %v828_v34  ;;  %v825_v35 = vpop.f32.mrb[10].mxu1 }
 0x24a   : > { %v1431_v36 = vpop.f32.mrb[11].mxu1 }
 0x24f   : > { %v941_v37 = vpop.f32.mrb[12].mxu1 }
 0x250   : > { %v1442_v38 = vpop.f32.mrb[13].mxu1  ;;  %v947_v39 = vsel %vm547_vm2, %v941_v37, -inf }
 0x251   : > { %948 = vmax.xlane.f32.xlu1 %v947_v39  ;;  %v944_v40 = vpop.f32.mrb[14].mxu1 }
 0x252   : > { %v1443_v41 = vpop.f32.mrb[15].mxu1 }
 0x25c   : > { %v596_v42 = vpop.xlane.xlu1 %595 }
 0x25d   : > { %v597_v43 = vsub.f32 %v588_v22, %v596_v42 }
 0x25f   : > { %v598_v44 = vmul.f32 1.442695, %v597_v43 }
 0x261   : > { %1531 = vpow2.f32 %v598_v44 }
 0x26b   : > { %v1532_v45 = vpop.eup %1531 }
 0x26c   : > { %v600_v46 = vsel %vm547_vm2, %v1532_v45, 0.0 }
 0x26d   : > { %601 = vadd.xlane.f32.xlu0 %v600_v46 }
 0x2ce   : > { %v711_v49 = vpop.xlane.xlu0 %710 }
 0x2cf   : > { %v712_v50 = vsub.f32 %v703_v27, %v711_v49 }
 0x2d1   : > { %v713_v51 = vmul.f32 1.442695, %v712_v50 }
 0x2d3   : > { %1533 = vpow2.f32 %v713_v51 }
 0x2d6   : > { %v830_v52 = vpop.xlane.xlu0 %829 }
 0x2d7   : > { %v831_v53 = vsub.f32 %v822_v32, %v830_v52  ;;  %v1530_v32 = vld [vmem:[%s1986_s5 + $0x8] sm:$0xff]  }
 0x2d8   : > { %1453 = vmatpush3.bf16.msra.mxu1 %v1530_v32 }
 0x2d9   : > { %v832_v54 = vmul.f32 1.442695, %v831_v53 }
 0x2db   : > { %1535 = vpow2.f32 %v832_v54 }
 0x2dd   : > { %v1534_v55 = vpop.eup %1533 }
 0x2de   : > { %v949_v56 = vpop.xlane.xlu1 %948  ;;  %v715_v57 = vsel %vm547_vm2, %v1534_v55, 0.0 }
 0x2df   : > { %v950_v58 = vsub.f32 %v941_v37, %v949_v56  ;;  %716 = vadd.xlane.f32.xlu1 %v715_v57 }
 0x2e1   : > { %v951_v59 = vmul.f32 1.442695, %v950_v58 }
 0x2e3   : > { %1537 = vpow2.f32 %v951_v59 }
 0x2e5   : > { %v1536_v60 = vpop.eup %1535 }
 0x2e6   : > { %v834_v61 = vsel %vm547_vm2, %v1536_v60, 0.0 }
 0x2e7   : > { %835 = vadd.xlane.f32.xlu0 %v834_v61 }
 0x2ed   : > { %v1538_v62 = vpop.eup %1537 }
 0x2ee   : > { %v953_v63 = vsel %vm547_vm2, %v1538_v62, 0.0 }
 0x2ef   : > { %954 = vadd.xlane.f32.xlu1 %v953_v63 }
 0x2fa   : > { %v602_v0 = vpop.xlane.xlu0 %601 }
 0x2fb   : > { %1539 = vrcp.f32 %v602_v0 }
 0x305   : > { %v1540_v2 = vpop.eup %1539 }
 0x306   : > { %v605_v4 = vmul.f32 %v1540_v2, %v1532_v45 }
 0x308   : > { %v607_v5 = vpack.c.bf16 %v605_v4, %v605_v4  ;;  %606 = vst.msk [vmem:[%s1854_s16] sm:$0xff] %vm547_vm2, %v605_v4 }
 0x30a   : > { %1411 = vmatmul.mubr.msk.bf16.vlgmr.msra.gmra.mrb[4].mxu0 %vm547_vm2, %v607_v5 }
 0x30b   : > { %1421 = vmatpush3.bf16.msra.mxu0 %v728_v6  ;;  %1422 = vmatprep.mubr.msk.bf16.mxu0 %vm1660_vm0, %v1659_v1 }
 0x30c   : > { %1432 = vmatprep.subr.bf16.mxu0 %v1659_v1 }
 0x36c   : > { %v717_v7 = vpop.xlane.xlu1 %716 }
 0x36d   : > { %1541 = vrcp.f32 %v717_v7 }
 0x374   : > { %v836_v8 = vpop.xlane.xlu0 %835 }
 0x375   : > { %1543 = vrcp.f32 %v836_v8 }
 0x377   : > { %v1542_v9 = vpop.eup %1541 }
 0x378   : > { %v720_v11 = vmul.f32 %v1542_v9, %v1534_v55 }
 0x37a   : > { %v723_v12 = vpack.c.bf16 %v720_v11, %v720_v11  ;;  %1346 = vst.msk [vmem:[%s1854_s16 + $0x8] sm:$0xff] %vm547_vm2, %v720_v11 }
 0x37c   : > { %1423 = vmatmul.mubr.msk.bf16.vlgmr.msra.gmra.mrb[8].mxu0 %vm547_vm2, %v723_v12  ;;  %v955_v14 = vpop.xlane.xlu1 %954 }
 0x37d   : > { %1433 = vmatpush3.bf16.msra.mxu0 %v847_v13  ;;  %1545 = vrcp.f32 %v955_v14  ;;  %1434 = vmatprep.mubr.msk.bf16.mxu0 %vm1660_vm0, %v1659_v1 }
 0x37e   : > { %1444 = vmatprep.subr.bf16.mxu0 %v1659_v1 }
 0x37f   : > { %v1544_v15 = vpop.eup %1543 }
 0x380   : > { %v839_v17 = vmul.f32 %v1544_v15, %v1536_v60 }
 0x382   : > { %v842_v18 = vpack.c.bf16 %v839_v17, %v839_v17  ;;  %1351 = vst.msk [vmem:[%s1854_s16 + $0x10] sm:$0xff] %vm547_vm2, %v839_v17 }
 0x384   : > { %1435 = vmatmul.mubr.msk.bf16.vlgmr.msra.gmra.mrb[12].mxu0 %vm547_vm2, %v842_v18 }
 0x385   : > { %1445 = vmatpush3.bf16.msra.mxu0 %v966_v19  ;;  %1446 = vmatprep.mubr.msk.bf16.mxu0 %vm1660_vm0, %v1659_v1 }
 0x387   : > { %v1546_v20 = vpop.eup %1545 }
 0x388   : > { %v958_v21 = vmul.f32 %v1546_v20, %v1538_v62 }
 0x38a   : > { %v961_v22 = vpack.c.bf16 %v958_v21, %v958_v21  ;;  %1356 = vst.msk [vmem:[%s1854_s16 + $0x18] sm:$0xff] %vm547_vm2, %v958_v21 }
 0x38c   : > { %1447 = vmatmul.mubr.msk.bf16.vlgmr.msra.gmra.mrb[16].mxu0 %vm547_vm2, %v961_v22 }
 0x3dd   : > { %v649_v23 = vpop.f32.mrb[4].mxu0 }
 0x3de   : > { %655 = vst.msk [vmem:[#allocation2] sm:$0xff] %vm547_vm2, %v649_v23  ;;  %v1412_v24 = vpop.f32.mrb[5].mxu0 }
 0x3df   : > { %v652_v25 = vpop.f32.mrb[6].mxu0 }
 0x3e0   : > { %v1413_v26 = vpop.f32.mrb[7].mxu0 }
 0x44f   : > { %v764_v27 = vpop.f32.mrb[8].mxu0 }
 0x450   : > { %771 = vrot.lane.b32.xlu0 %v764_v27, %s1664_s19  ;;  %v1424_v28 = vpop.f32.mrb[9].mxu0 }
 0x451   : > { %v767_v29 = vpop.f32.mrb[10].mxu0 }
 0x452   : > { %v1425_v30 = vpop.f32.mrb[11].mxu0 }
 0x457   : > { %v883_v33 = vpop.f32.mrb[12].mxu0 }
 0x458   : > { %890 = vrot.lane.b32.xlu1 %v883_v33, %s1665_s26  ;;  %v1436_v34 = vpop.f32.mrb[13].mxu0  ;;  %s1667_s26 = smov [#allocation5]  }
 0x459   : > { %v886_v35 = vpop.f32.mrb[14].mxu0 }
 0x45a   : > { %v1437_v36 = vpop.f32.mrb[15].mxu0 }
 0x45f   : > { %v1002_v37 = vpop.f32.mrb[16].mxu0 }
 0x460   : > { %1009 = vrot.lane.b32.xlu1 %v1002_v37, %s1666_s11  ;;  %v1448_v38 = vpop.f32.mrb[17].mxu0  ;;  %s1551_s11 = sshll.u32 %s1667_s26, 4  ;;  %s1552_s11 = int_to_ptr.vmem [resolvable:$false] %s1551_s11 }
 0x461   : > { %v1005_v39 = vpop.f32.mrb[18].mxu0  ;;  %s1553_s16 = scalar_lea.vmem %s1552_s11, 1024  ;;  %p1554_p1 = scmp.lt.s32.totalorder %s1892_s12, %s1552_s11 }
 0x462   : > { %v1449_v40 = vpop.f32.mrb[19].mxu0  ;;  %p1555_p2 = scmp.lt.s32.totalorder %s1553_s16, %s1547_s24 }
 0x464   : > { %p1556_p3 = por %p1555_p2, %p1554_p1 }
 0x466   : > { %p1557_p5 = pnand %p1556_p3, %p1550_p0 }
 0x4c2   : > { %v772_v41 = vpop.permute.xlu0 %771 }
 0x4c3   : > { %775 = vst.msk [vmem:[#allocation2] sm:$0xff] %vm774_vm4, %v772_v41 }
 0x4ca   : > { %v891_v1 = vpop.permute.xlu1 %890 }
 0x4cb   : > { %894 = vst.msk [vmem:[#allocation2] sm:$0xff] %vm893_vm5, %v891_v1 }
 0x4d2   : > { %v1010_v42 = vpop.permute.xlu1 %1009 }
 0x4d3   : > { %1013 = vst.msk [vmem:[#allocation2] sm:$0xff] %vm1012_vm6, %v1010_v42 }
 0x4da   : > { %v1014_v43 = vld [vmem:[#allocation2] sm:$0xff] }
 0x4db   : > { %v1015_v44 = vpack.c.bf16 %v1014_v43, %v1014_v43 }
 0x4dd   : > { %1455 = vmatmul.mubr.msk.bf16.vlgmr.msra.gmra.mrb[16].mxu1 %vm500_vm1, %v1015_v44 }
 0x4de   : > { %1560 = shalt.err (!%p1557_p5)
}
 0x4df   : > { %s1561_s14 = scalar_lea.hbm %s1897_s21, 512  ;;  %s1565_s26 = scalar_lea.hbm %s1989_s8, 1024 }
 0x4e0   : > { %p1562_p6 = scmp.ne.s32.totalorder %s1897_s21, %s1561_s14  ;;  %p1566_p10 = scmp.lt.u32.totalorder %s1897_s21, %s1989_s8 }
 0x4e1   : > { %p1567_p11 = scmp.lt.u32.totalorder %s1565_s26, %s1561_s14  ;;  %p1569_p13 = scmp.lt.u32.totalorder %s1561_s14, %s1897_s21 }
 0x4e2   : > { %p1563_p7 = pnand %p1562_p6, %p1755_p4 }
 0x4e3   : > { %p1568_p12 = por %p1567_p11, %p1566_p10 }
 0x4e4   : > { %p1564_p9 = pneg %p1563_p7 }
 0x4e5   : > { %p1570_p0 = por %p1569_p13, %p1568_p12 }
 0x4e7   : > { %p1571_p1 = pnand %p1570_p0, %p1564_p9 }
 0x4e9   : > { %1574 = shalt.err (!%p1571_p1)
}
 0x4ea   : > { %s1668_s24 = smov 128   ;;  %s1998_s16 = scalar_lea.sflag [#allocation6], %s1849_s23  ;;  %v1361_v45 = vld [vmem:[%s1987_s6] ss:$0 sm:$0xff] }
 0x4eb   : > { %1459 = dma.vmem_to_hbm [thread:$0]  (%p1755_p4), %s1892_s12, 512, %s1897_s21, %s1998_s16, %s1668_s24, %s1668_s24, %s1664_s19  }
 0x4ec   : > { %s1330_s22 = sshll.u32 %s1849_s23, 3  ;;  %s1364_s14 = sshll.u32 %s1649_s30, 7 }
 0x4ed   : > { %s426_s26 = scalar_lea.vmem [#allocation3], %s1330_s22  ;;  %s1932_s2 = scalar_lea.hbm %s1988_s7, %s1364_s14 }
 0x4ee   : > { %s1115_s11 = sshll.u32 %s426_s26, 4  ;;  %s1096_s30 = scalar_lea.sflag [#allocation4], %s1849_s23  ;;  %s1934_s11 = int_to_ptr.vmem [resolvable:$true] %s1115_s11 }
 0x4ef   : > { %s1575_s19 = scalar_lea.vmem %s1934_s11, 128  ;;  %s1669_s12 = smov [#allocation3]  }
 0x4f0   : > { %p1576_p2 = scmp.ne.s32.totalorder %s1934_s11, %s1575_s19  ;;  %s1579_s21 = sshll.u32 %s1669_s12, 4  ;;  %s1580_s21 = int_to_ptr.vmem [resolvable:$false] %s1579_s21 }
 0x4f1   : > { %s1581_s0 = scalar_lea.vmem %s1580_s21, 256  ;;  %p1582_p6 = scmp.lt.s32.totalorder %s1934_s11, %s1580_s21 }
 0x4f2   : > { %p1577_p3 = pnand %p1576_p2, %p1755_p4  ;;  %p1583_p7 = scmp.lt.s32.totalorder %s1581_s0, %s1575_s19 }
 0x4f4   : > { %p1578_p5 = pneg %p1577_p3  ;;  %p1584_p9 = por %p1583_p7, %p1582_p6 }
 0x4f6   : > { %p1585_p10 = pnand %p1584_p9, %p1578_p5 }
 0x5b0   : > { %v1069_v46 = vpop.f32.mrb[16].mxu1 }
 0x5b1   : > { %v1086_v47 = vadd.f32 %v1361_v45, %v1069_v46  ;;  %v1456_v48 = vpop.f32.mrb[17].mxu1 }
 0x5b2   : > { %v1072_v49 = vpop.f32.mrb[18].mxu1 }
 0x5b3   : > { %v1457_v50 = vpop.f32.mrb[19].mxu1  ;;  %1087 = vst.msk [vmem:[%s426_s26] sm:$0xff] %vm500_vm1, %v1086_v47 }
 0x5b4   : > { %1588 = shalt.err (!%p1585_p10)
}
 0x5b5   : > { %s1589_s1 = scalar_lea.hbm %s1932_s2, 128  ;;  %s1593_s16 = scalar_lea.hbm %s1988_s7, 256 }
 0x5b6   : > { %p1590_p11 = scmp.ne.s32.totalorder %s1932_s2, %s1589_s1  ;;  %p1594_p0 = scmp.lt.u32.totalorder %s1932_s2, %s1988_s7 }
 0x5b7   : > { %p1595_p1 = scmp.lt.u32.totalorder %s1593_s16, %s1589_s1  ;;  %p1597_p3 = scmp.lt.u32.totalorder %s1589_s1, %s1932_s2 }
 0x5b8   : > { %p1591_p12 = pnand %p1590_p11, %p1755_p4 }
 0x5b9   : > { %p1596_p2 = por %p1595_p1, %p1594_p0 }
 0x5ba   : > { %p1592_p13 = pneg %p1591_p12 }
 0x5bb   : > { %p1598_p5 = por %p1597_p3, %p1596_p2 }
 0x5bd   : > { %p1599_p6 = pnand %p1598_p5, %p1592_p13 }
 0x5bf   : > { %1602 = shalt.err (!%p1599_p6)
}
 0x5c0   : > { %1458 = dma.vmem_to_hbm [thread:$0]  (%p1755_p4), %s1934_s11, 128, %s1932_s2, %s1096_s30  }
 0x5c1 PF: > { %p1469_p7 = scmp.ge.s32.totalorder %s1657_s10, 2  ;;  %s1146_s20 = sand.u32 1, %s1637_s27  }
 0x5c2   : > { %s1147_s14 = scalar_lea.sflag [#allocation4], %s1146_s20 }
 0x5c3   : > { %p1463_p9 = pnand %p1469_p7, %p1762_p8 }
 0x5c5   : > { %1628 = dma.done.wait (!%p1463_p9), %s1147_s14, 128  }
 0x5c6   : > { %1630 = vsyncadd (!%p1463_p9), %s1147_s14, 4294967168  ;;  %s1156_s26 = scalar_lea.sflag [#allocation6], %s1146_s20 }
 0x5c7   : > { %1632 = dma.done.wait (!%p1463_p9), %s1156_s26, 512  }
 0x5c8   : > { %1634 = vsyncadd (!%p1463_p9), %s1156_s26, 4294966784  ;;  %s25_s10 = sadd.s32 1, %s1657_s10   ;;  %s1999_s27 = smov %s1641_s28 }
 0x5c9   : > { %p22_p10 = scmp.ge.s32.totalorder %s25_s10, 4   ;;  %s2000_s28 = smov %s1645_s29 }
 0x5ca   : > { %s2001_s29 = smov %s1768_s18  ;;  %s2002_s30 = smov %s1653_s9 }
 0x5cb   : > { %s2003_s9 = smov %s2005_s13  ;;  %24 = sbr.rel (!%p22_p10) target bundleno = 10 (0xa), region = 132 }
 0x5d2   :  { %1161 = vsyncpa [#allocation4], 1 }
 0x5d3   :  { %1163 = vsyncpa [#allocation4 + $0x1], 1 }
 0x5d4   :  { %1164 = vsyncpa [#allocation6], 1 }
 0x5d5   :  { %1166 = vsyncpa [#allocation6 + $0x1], 1 }

</bundles_post_ra>
